<compile_context>
chip_gen: v7x
topology: tpu7x:2x2x1
jax: 0.10.0
libtpu: 0.0.40
codegen_flags: <defaults>
</compile_context>

<pallas_src>
import numpy as np
import jax
import jax.numpy as jnp
from jax.experimental import pallas as pl
from jax.experimental.pallas import tpu as pltpu


def _mz_embed_kernel(mz_ref, fbd_ref, w1s_ref, w1c_ref, b1_ref, w2_ref, b2_ref,
                     out_ref):
    # All operands are "row-packed": P original rows share one sublane row so
    # every VPU/EUP op (sin/cos/ReLU/bias) runs at full 128-lane density.
    #   mz_ref : (tm/P, P)        per-step block of packed m/z values
    #   fbd_ref: (P, P*half)      block-diagonal frequency matrix
    #   w1s/w1c: (P*half, P*D)    block-diagonal halves of W1^T (sin / cos rows)
    #   b1/b2  : (1, P*D)         biases tiled P times along lanes
    #   w2_ref : (P*D, P*D)       block-diagonal W2^T
    #   out_ref: (tm/P, P*D)      packed output rows (lane-dense store)
    #
    # omega_packed[j, p*half + k] = mz[j*P + p] * freq[k] -- one MXU push, no
    # cross-lane relayout needed.
    omega = jnp.dot(mz_ref[...], fbd_ref[...], preferred_element_type=jnp.float32)
    s = jnp.sin(omega)
    c = jnp.cos(omega)
    # concat([sin, cos], -1) @ W1^T  ==  sin @ W1^T[:half] + cos @ W1^T[half:]
    h = (jnp.dot(s, w1s_ref[...], preferred_element_type=jnp.float32)
         + jnp.dot(c, w1c_ref[...], preferred_element_type=jnp.float32)
         + b1_ref[...])
    h = jnp.maximum(h, 0.0)                                  # ReLU
    y = jnp.dot(h, w2_ref[...], preferred_element_type=jnp.float32) + b2_ref[...]
    out_ref[...] = y.astype(out_ref.dtype)


def sinusoidal_mz_embedding(mz, freq, w1, b1, w2, b2, *, tm=8192):
    """mz: (B, S, 1); freq: (D/2,); w1/w2: (D, D) stored as (in, out) = W^T; b1/b2: (D,)."""
    B, S, _ = mz.shape
    D = w1.shape[0]
    half = freq.shape[0]
    assert 2 * half == D
    M = B * S
    f32 = jnp.float32

    # Row-packing factor: pack P consecutive rows into the 128-lane dimension so
    # the packed feature width (P*half, P*D) is a multiple of 128.
    if D % 128 == 0:
        P = 1
    else:
        assert 128 % half == 0, "embd_dim/2 must divide 128 (or embd_dim % 128 == 0)"
        P = 128 // half

    # tm/P must be a multiple of 8 (sublanes of the packed blocks) -> tm % (8*P) == 0.
    row_align = 8 * P
    M_ceil = pl.cdiv(M, row_align) * row_align
    tm = min(tm, M_ceil)
    if M_ceil >= 2 * row_align:
        # Keep at least 2 grid steps so the 'parallel' grid axis can shard across
        # both TensorCores on megacore parts (v7x); no-op on 1-TC chips.
        tm = min(tm, pl.cdiv(M_ceil // 2, row_align) * row_align)
    tm = max(row_align, (tm // row_align) * row_align)
    nb = pl.cdiv(M, tm)
    M_pad = nb * tm

    mz_rows = mz.reshape(M, 1).astype(f32)
    if M_pad != M:
        # Padded rows compute sin(0)/cos(0) through both Linears and are sliced off.
        mz_rows = jnp.pad(mz_rows, ((0, M_pad - M), (0, 0)))
    mz_pk = mz_rows.reshape(M_pad // P, P)

    # Block-diagonal weight expansion (built once; ~0.5 MB f32 for D=32, P=8).
    eye = jnp.eye(P, dtype=f32)
    w1f = w1.astype(f32)
    fbd = jnp.kron(eye, freq.reshape(1, half).astype(f32))      # (P, P*half)
    w1s_bd = jnp.kron(eye, w1f[:half, :])                       # (P*half, P*D)
    w1c_bd = jnp.kron(eye, w1f[half:, :])                       # (P*half, P*D)
    w2_bd = jnp.kron(eye, w2.astype(f32))                       # (P*D, P*D)
    b1_t = jnp.tile(b1.reshape(1, D).astype(f32), (1, P))       # (1, P*D)
    b2_t = jnp.tile(b2.reshape(1, D).astype(f32), (1, P))       # (1, P*D)

    weight_bytes = 4 * (2 * (P * half) * (P * D) + (P * D) ** 2
                        + P * (P * half) + 2 * (P * D))
    cost = pl.CostEstimate(
        flops=2 * M_pad * (2 * half * D + D * D + half),
        transcendentals=M_pad * D,                    # sin + cos, half each
        bytes_accessed=4 * M_pad * (1 + D) + weight_bytes,
    )

    out = pl.pallas_call(
        _mz_embed_kernel,
        out_shape=jax.ShapeDtypeStruct((M_pad // P, P * D), jnp.float32),
        grid_spec=pltpu.PrefetchScalarGridSpec(
            num_scalar_prefetch=0,
            grid=(nb,),
            in_specs=[
                pl.BlockSpec((tm // P, P), lambda i: (i, 0)),       # mz (per-step block)
                pl.BlockSpec((P, P * half), lambda i: (0, 0)),      # freq block-diag
                pl.BlockSpec((P * half, P * D), lambda i: (0, 0)),  # W1^T sin-half (bd)
                pl.BlockSpec((P * half, P * D), lambda i: (0, 0)),  # W1^T cos-half (bd)
                pl.BlockSpec((1, P * D), lambda i: (0, 0)),         # b1 tiled
                pl.BlockSpec((P * D, P * D), lambda i: (0, 0)),     # W2^T (bd)
                pl.BlockSpec((1, P * D), lambda i: (0, 0)),         # b2 tiled
            ],
            out_specs=pl.BlockSpec((tm // P, P * D), lambda i: (i, 0)),
        ),
        compiler_params=pltpu.CompilerParams(
            dimension_semantics=("parallel",),
            vmem_limit_bytes=32 * 1024 * 1024,
        ),
        cost_estimate=cost,
    )(mz_pk, fbd, w1s_bd, w1c_bd, b1_t, w2_bd, b2_t)

    out = out.reshape(M_pad, D)
    if M_pad != M:
        out = out[:M]
    return out.reshape(B, S, D)


def make_params(embd_dim, key, mz_log_lims=(-2, 3)):
    """Deterministic parameter construction mirroring the module's __init__ shapes."""
    half = embd_dim // 2
    # frequency = 2*pi / logspace(lims[0], lims[1], D/2)   (torch.logspace is base-10)
    freq = (2.0 * np.pi /
            np.power(10.0, np.linspace(mz_log_lims[0], mz_log_lims[1], half,
                                       dtype=np.float64))).astype(np.float32)
    k1, k2, k3, k4 = jax.random.split(key, 4)
    bound = 1.0 / np.sqrt(embd_dim)
    # PyTorch Linear stores W as (out, in); we keep weights as (in, out) = W^T
    # so the kernel does x @ W^T directly.
    w1 = jax.random.uniform(k1, (embd_dim, embd_dim), jnp.float32, -bound, bound)
    b1 = jax.random.uniform(k2, (embd_dim,), jnp.float32, -bound, bound)
    w2 = jax.random.uniform(k3, (embd_dim, embd_dim), jnp.float32, -bound, bound)
    b2 = jax.random.uniform(k4, (embd_dim,), jnp.float32, -bound, bound)
    return jnp.asarray(freq), w1, b1, w2, b2


def reference(mz, freq, w1, b1, w2, b2):
    omega = freq.reshape(1, 1, -1) * mz
    x = jnp.concatenate([jnp.sin(omega), jnp.cos(omega)], axis=2).astype(jnp.float32)
    h = jnp.maximum(x @ w1 + b1, 0.0)
    return h @ w2 + b2


if __name__ == "__main__":
    B, S, D = 2, 64, 32  # batch=2, seq=64, embd_dim=32
    key = jax.random.PRNGKey(0)
    kp, kx = jax.random.split(key)
    freq, w1, b1, w2, b2 = make_params(D, kp)
    # m/z values in a physically plausible positive range
    mz = jax.random.uniform(kx, (B, S, 1), jnp.float32, 0.0, 100.0)

    out = sinusoidal_mz_embedding(mz, freq, w1, b1, w2, b2)
    out = jax.block_until_ready(out)

    ref = reference(mz, freq, w1, b1, w2, b2)
    np.testing.assert_allclose(np.asarray(out), np.asarray(ref), rtol=5e-5, atol=5e-5)
    print("KERNEL_OK")
</pallas_src>

<mosaic_0001>
module attributes {stable_mosaic.version = 11 : i64} {
  func.func @_mz_embed_kernel(%arg0: i32, %arg1: memref<8x8xf32, #tpu.memory_space<vmem>>, %arg2: memref<8x128xf32, #tpu.memory_space<vmem>>, %arg3: memref<128x256xf32, #tpu.memory_space<vmem>>, %arg4: memref<128x256xf32, #tpu.memory_space<vmem>>, %arg5: memref<1x256xf32, #tpu.memory_space<vmem>>, %arg6: memref<256x256xf32, #tpu.memory_space<vmem>>, %arg7: memref<1x256xf32, #tpu.memory_space<vmem>>, %arg8: memref<8x256xf32, #tpu.memory_space<vmem>>) attributes {dimension_semantics = [#tpu.dimension_semantics<parallel>], iteration_bounds = array<i64: 2>, scalar_prefetch = 0 : i64, scratch_operands = 0 : i64, tpu.core_type = #tpu.core_type<tc>, window_params = [{transform_indices = @transform_0, window_bounds = array<i64: 8, 8>}, {pipeline_mode = #tpu.pipeline_mode<synchronous>, transform_indices = @transform_1, window_bounds = array<i64: 8, 128>}, {pipeline_mode = #tpu.pipeline_mode<synchronous>, transform_indices = @transform_2, window_bounds = array<i64: 128, 256>}, {pipeline_mode = #tpu.pipeline_mode<synchronous>, transform_indices = @transform_3, window_bounds = array<i64: 128, 256>}, {pipeline_mode = #tpu.pipeline_mode<synchronous>, transform_indices = @transform_4, window_bounds = array<i64: 1, 256>}, {pipeline_mode = #tpu.pipeline_mode<synchronous>, transform_indices = @transform_5, window_bounds = array<i64: 256, 256>}, {pipeline_mode = #tpu.pipeline_mode<synchronous>, transform_indices = @transform_6, window_bounds = array<i64: 1, 256>}, {transform_indices = @transform_7, window_bounds = array<i64: 8, 256>}]} {
    %c0 = arith.constant 0 : index
    %c0_0 = arith.constant 0 : index
    %0 = vector.load %arg1[%c0, %c0_0] : memref<8x8xf32, #tpu.memory_space<vmem>>, vector<8x8xf32>
    %c0_1 = arith.constant 0 : index
    %c0_2 = arith.constant 0 : index
    %1 = vector.load %arg2[%c0_1, %c0_2] : memref<8x128xf32, #tpu.memory_space<vmem>>, vector<8x128xf32>
    %cst = arith.constant dense<0.000000e+00> : vector<8x128xf32>
    %2 = tpu.matmul %0, %1, %cst {dimension_numbers = #tpu.dot_dimension_numbers<[1], [0], [0], [1], [0, 0, 1, 1], [], []>} : vector<8x8xf32>, vector<8x128xf32>, vector<8x128xf32> -> vector<8x128xf32>
    %3 = math.sin %2 : vector<8x128xf32>
    %4 = math.cos %2 : vector<8x128xf32>
    %c0_3 = arith.constant 0 : index
    %c0_4 = arith.constant 0 : index
    %5 = vector.load %arg3[%c0_3, %c0_4] : memref<128x256xf32, #tpu.memory_space<vmem>>, vector<128x256xf32>
    %cst_5 = arith.constant dense<0.000000e+00> : vector<8x256xf32>
    %6 = tpu.matmul %3, %5, %cst_5 {dimension_numbers = #tpu.dot_dimension_numbers<[1], [0], [0], [1], [0, 0, 1, 1], [], []>} : vector<8x128xf32>, vector<128x256xf32>, vector<8x256xf32> -> vector<8x256xf32>
    %c0_6 = arith.constant 0 : index
    %c0_7 = arith.constant 0 : index
    %7 = vector.load %arg4[%c0_6, %c0_7] : memref<128x256xf32, #tpu.memory_space<vmem>>, vector<128x256xf32>
    %cst_8 = arith.constant dense<0.000000e+00> : vector<8x256xf32>
    %8 = tpu.matmul %4, %7, %cst_8 {dimension_numbers = #tpu.dot_dimension_numbers<[1], [0], [0], [1], [0, 0, 1, 1], [], []>} : vector<8x128xf32>, vector<128x256xf32>, vector<8x256xf32> -> vector<8x256xf32>
    %9 = arith.addf %6, %8 : vector<8x256xf32>
    %c0_9 = arith.constant 0 : index
    %c0_10 = arith.constant 0 : index
    %10 = vector.load %arg5[%c0_9, %c0_10] : memref<1x256xf32, #tpu.memory_space<vmem>>, vector<1x256xf32>
    %11 = vector.broadcast %10 : vector<1x256xf32> to vector<8x256xf32>
    %12 = arith.addf %9, %11 : vector<8x256xf32>
    %cst_11 = arith.constant 0.000000e+00 : f32
    %13 = vector.broadcast %cst_11 : f32 to vector<8x256xf32>
    %14 = arith.maximumf %12, %13 : vector<8x256xf32>
    %c0_12 = arith.constant 0 : index
    %c0_13 = arith.constant 0 : index
    %15 = vector.load %arg6[%c0_12, %c0_13] : memref<256x256xf32, #tpu.memory_space<vmem>>, vector<256x256xf32>
    %cst_14 = arith.constant dense<0.000000e+00> : vector<8x256xf32>
    %16 = tpu.matmul %14, %15, %cst_14 {dimension_numbers = #tpu.dot_dimension_numbers<[1], [0], [0], [1], [0, 0, 1, 1], [], []>} : vector<8x256xf32>, vector<256x256xf32>, vector<8x256xf32> -> vector<8x256xf32>
    %c0_15 = arith.constant 0 : index
    %c0_16 = arith.constant 0 : index
    %17 = vector.load %arg7[%c0_15, %c0_16] : memref<1x256xf32, #tpu.memory_space<vmem>>, vector<1x256xf32>
    %18 = vector.broadcast %17 : vector<1x256xf32> to vector<8x256xf32>
    %19 = arith.addf %16, %18 : vector<8x256xf32>
    %c0_17 = arith.constant 0 : index
    %c0_18 = arith.constant 0 : index
    %20 = vector.load %arg8[%c0_17, %c0_18] : memref<8x256xf32, #tpu.memory_space<vmem>>, vector<8x256xf32>
    tpu.vector_store %arg8[%c0_17, %c0_18], %19 {strides = array<i32>} : memref<8x256xf32, #tpu.memory_space<vmem>>, vector<8x256xf32>,
    return
  }
  func.func @transform_0(%arg0: i32) -> (i32, i32) {
    %c0_i32 = arith.constant 0 : i32
    %c0_i32_0 = arith.constant 0 : i32
    return %arg0, %c0_i32 : i32, i32
  }
  func.func @transform_1(%arg0: i32) -> (i32, i32) {
    %c0_i32 = arith.constant 0 : i32
    %c0_i32_0 = arith.constant 0 : i32
    %c0_i32_1 = arith.constant 0 : i32
    return %c0_i32, %c0_i32_0 : i32, i32
  }
  func.func @transform_2(%arg0: i32) -> (i32, i32) {
    %c0_i32 = arith.constant 0 : i32
    %c0_i32_0 = arith.constant 0 : i32
    %c0_i32_1 = arith.constant 0 : i32
    return %c0_i32, %c0_i32_0 : i32, i32
  }
  func.func @transform_3(%arg0: i32) -> (i32, i32) {
    %c0_i32 = arith.constant 0 : i32
    %c0_i32_0 = arith.constant 0 : i32
    %c0_i32_1 = arith.constant 0 : i32
    return %c0_i32, %c0_i32_0 : i32, i32
  }
  func.func @transform_4(%arg0: i32) -> (i32, i32) {
    %c0_i32 = arith.constant 0 : i32
    %c0_i32_0 = arith.constant 0 : i32
    %c0_i32_1 = arith.constant 0 : i32
    return %c0_i32, %c0_i32_0 : i32, i32
  }
  func.func @transform_5(%arg0: i32) -> (i32, i32) {
    %c0_i32 = arith.constant 0 : i32
    %c0_i32_0 = arith.constant 0 : i32
    %c0_i32_1 = arith.constant 0 : i32
    return %c0_i32, %c0_i32_0 : i32, i32
  }
  func.func @transform_6(%arg0: i32) -> (i32, i32) {
    %c0_i32 = arith.constant 0 : i32
    %c0_i32_0 = arith.constant 0 : i32
    %c0_i32_1 = arith.constant 0 : i32
    return %c0_i32, %c0_i32_0 : i32, i32
  }
  func.func @transform_7(%arg0: i32) -> (i32, i32) {
    %c0_i32 = arith.constant 0 : i32
    %c0_i32_0 = arith.constant 0 : i32
    return %arg0, %c0_i32 : i32, i32
  }
}

</mosaic_0001>

<bundles_post_ra>
// kernel: tpu_custom_call.1
= control target key start
LH: loop header
LB: loop body
LE: loop exit
PB: predicated region body
PF: predicated region fallthrough
CT: control target
= control target key end

     0   :  { %12 = vsyncpa [#allocation3], 0  ;;  %s1816_s0 = inlined_call_operand.vmem [shape: f32[16,8], index: 0, kind: input, shape index: {}]   ;;  %s1817_s1 = inlined_call_operand.vmem [shape: f32[8,128], index: 1, kind: input, shape index: {}]   ;;  %s1818_s2 = inlined_call_operand.hbm [shape: f32[128,256], index: 2, kind: input, shape index: {}]   ;;  %s1819_s3 = inlined_call_operand.hbm [shape: f32[128,256], index: 3, kind: input, shape index: {}]   ;;  %s1820_s4 = inlined_call_operand.vmem [shape: f32[1,256], index: 4, kind: input, shape index: {}]   ;;  %s1821_s5 = inlined_call_operand.hbm [shape: f32[256,256], index: 5, kind: input, shape index: {}]   ;;  %s1822_s6 = inlined_call_operand.vmem [shape: f32[1,256], index: 6, kind: input, shape index: {}]   ;;  %s1823_s7 = inlined_call_operand.hbm [shape: f32[16,256], index: 7, kind: output, shape index: {}]  }
   0x1   :  { %13 = vsyncpa [#allocation6], 0 }
   0x2   :  { %14 = vsyncpa [#allocation4], 0 }
   0x3   :  { %16 = vsyncpa [#allocation4 + $0x1], 0  ;;  %s1539_s24 = smov 0   ;;  %s1541_s25 = smov 0  }
   0x4   :  { %s1543_s26 = smov 0   ;;  %s1545_s27 = smov 0  }
   0x5 LB: > { %1830 = sst [smem:[#allocation12_spill]] %s1479_s26  ;;  %s1560_s28 = sadd.s32 4294967295, %s1483_s27   ;;  %s1483_s27 = sphi %s1545_s27, %s1845_s27   ;;  %s1479_s26 = sphi %s1543_s26, %s1847_s26   ;;  %s1475_s25 = sphi %s1541_s25, %s1849_s25   ;;  %s1471_s24 = sphi %s1539_s24, %s1848_s24  }
   0x6   : > { %s1077_s29 = sadd.s32 4294967294, %s1483_s27   ;;  %s1564_s30 = sadd.s32 1, %s1483_s27  }
   0x7   : > { %1831 = sst [smem:[#allocation13_spill]] %s1564_s30  ;;  %s181_s8 = sadd.s32 1, %s1479_s26 }
   0x8   : > { %s178_s9 = ssub.s32 %s1483_s27, %s1564_s30  ;;  %p191_p0 = scmp.ne.s32.totalorder %s1479_s26, %s1475_s25 }
   0x9   : > { %p179_p1 = scmp.eq.s32.totalorder %s178_s9, 0  ;;  %p192_p2 = scmp.eq.s32.totalorder %s1560_s28, 1 }
   0xa   : > { %p197_p3 = scmp.ne.s32.totalorder %s1475_s25, %s1471_s24  ;;  %p198_p4 = scmp.eq.s32.totalorder %s1077_s29, 1 }
   0xb   : > { %s1575_s10 = scalar_select %p179_p1, %s1479_s26, %s181_s8  }
   0xc   : > { %p1577_p5 = por %p192_p2, %p191_p0  ;;  %p1581_p6 = por %p198_p4, %p197_p3 }
   0xd   : > { %1832 = sst [smem:[#allocation14_spill]] %s1575_s10  ;;  %p1078_p7 = scmp.ge.s32.totalorder %s1483_s27, 1 }
   0xe   : > { %s1833_s11 = scalar_select %p1577_p5, 1, 0 }
   0xf   : > { %s1834_s12 = scalar_select %p1581_p6, 1, 0 }
  0x10   : > { %p205_p8 = scmp.lt.s32.totalorder %s1483_s27, 3  ;;  %p1824_p9 = scmp.eq.s32.totalorder %s1560_s28, 0 }
  0x11   : > { %s1485_s14 = smov [#allocation5]   ;;  %s1486_s17 = smov [#allocation2]  }
  0x12   : > { %p1588_p10 = pnand %p1078_p7, %p205_p8  ;;  %s233_s15 = sshll.u32 %s1485_s14, 4  ;;  %s1594_s15 = int_to_ptr.vmem [resolvable:$true] %s233_s15 }
  0x13   : > { %s220_s18 = sshll.u32 %s1486_s17, 4  ;;  %s1487_s19 = smov [#allocation7]   ;;  %s1602_s18 = int_to_ptr.vmem [resolvable:$true] %s220_s18 }
  0x14   : > { %s1835_s13 = scalar_select %p1588_p10, 1, 0 }
  0x15   : > { %p1259_p11 = pneg %p1588_p10  ;;  %s1604_s20 = sshll.u32 %s1487_s19, 4  ;;  %s250_s20 = int_to_ptr.vmem [resolvable:$true] %s1604_s20 }
  0x16   : > { %s1329_s23 = scalar_lea.hbm %s1819_s3, 4096 }
  0x17   : > { %p1598_p12 = pnand %p1824_p9, %p1259_p11  ;;  %p1330_p13 = scmp.ne.s32.totalorder %s1819_s3, %s1329_s23 }
  0x18   : > { %p1336_p3 = scmp.lt.u32.totalorder %s1329_s23, %s1819_s3 }
  0x19   : > { %p1614_p0 = pneg %p1598_p12 }
  0x1b   : > { %p1332_p1 = pnand %p1614_p0, %p1330_p13 }
  0x1d   : > { %p1333_p2 = pneg %p1332_p1 }
  0x1f   : > { %p1338_p4 = pnand %p1336_p3, %p1333_p2 }
  0x21   : > { %1341 = shalt.err (!%p1338_p4)
}
  0x22   : > { %s1342_s19 = scalar_lea.vmem %s1594_s15, 4096  ;;  %p1350_p9 = scmp.lt.s32.totalorder %s1594_s15, %s1594_s15 }
  0x23   : > { %p1343_p7 = scmp.ne.s32.totalorder %s1594_s15, %s1342_s19  ;;  %p1351_p6 = scmp.lt.s32.totalorder %s1342_s19, %s1342_s19 }
  0x25   : > { %p1345_p8 = pnand %p1343_p7, %p1614_p0  ;;  %p1352_p13 = por %p1351_p6, %p1350_p9 }
  0x27   : > { %p1346_p11 = pneg %p1345_p8 }
  0x29   : > { %p1353_p1 = pnand %p1352_p13, %p1346_p11 }
  0x2b   : > { %1356 = shalt.err (!%p1353_p1)
}
  0x2c   : > { %s1488_s21 = smov 256   ;;  %s1489_s22 = smov 16  }
  0x2d   : > { %1265 = dma.hbm_to_vmem [thread:$0]  (!%p1598_p12), %s1819_s3, 4096, %s1594_s15, [#allocation6], %s1488_s21, %s1488_s21, %s1489_s22  }
  0x2e   : > { %s1357_s17 = scalar_lea.hbm %s1818_s2, 4096 }
  0x2f   : > { %p1358_p6 = scmp.ne.s32.totalorder %s1818_s2, %s1357_s17  ;;  %p1364_p3 = scmp.lt.u32.totalorder %s1357_s17, %s1818_s2 }
  0x31   : > { %p1360_p9 = pnand %p1358_p6, %p1614_p0 }
  0x33   : > { %p1361_p2 = pneg %p1360_p9 }
  0x35   : > { %p1366_p4 = pnand %p1364_p3, %p1361_p2 }
  0x37   : > { %1369 = shalt.err (!%p1366_p4)
}
  0x38   : > { %s1370_s15 = scalar_lea.vmem %s1602_s18, 4096  ;;  %p1378_p13 = scmp.lt.s32.totalorder %s1602_s18, %s1602_s18 }
  0x39   : > { %p1371_p7 = scmp.ne.s32.totalorder %s1602_s18, %s1370_s15  ;;  %p1379_p1 = scmp.lt.s32.totalorder %s1370_s15, %s1370_s15 }
  0x3b   : > { %p1373_p8 = pnand %p1371_p7, %p1614_p0  ;;  %p1380_p6 = por %p1379_p1, %p1378_p13 }
  0x3d   : > { %p1374_p11 = pneg %p1373_p8 }
  0x3f   : > { %p1381_p9 = pnand %p1380_p6, %p1374_p11 }
  0x41   : > { %1384 = shalt.err (!%p1381_p9)
}
  0x42   : > { %1262 = dma.hbm_to_vmem [thread:$0]  (!%p1598_p12), %s1818_s2, 4096, %s1602_s18, [#allocation3], %s1488_s21, %s1488_s21, %s1489_s22  }
  0x43   : > { %s1385_s29 = scalar_lea.hbm %s1821_s5, 8192 }
  0x44   : > { %p1386_p2 = scmp.ne.s32.totalorder %s1821_s5, %s1385_s29  ;;  %p1392_p7 = scmp.lt.u32.totalorder %s1385_s29, %s1821_s5 }
  0x46   : > { %p1388_p3 = pnand %p1386_p2, %p1614_p0 }
  0x48   : > { %p1389_p4 = pneg %p1388_p3 }
  0x4a   : > { %p1394_p8 = pnand %p1392_p7, %p1389_p4 }
  0x4c   : > { %1397 = shalt.err (!%p1394_p8)
}
  0x4d   : > { %s1398_s15 = scalar_lea.vmem %s250_s20, 8192  ;;  %p1406_p6 = scmp.lt.s32.totalorder %s250_s20, %s250_s20 }
  0x4e   : > { %p1399_p11 = scmp.ne.s32.totalorder %s250_s20, %s1398_s15  ;;  %p1407_p9 = scmp.lt.s32.totalorder %s1398_s15, %s1398_s15 }
  0x50   : > { %p1401_p13 = pnand %p1399_p11, %p1614_p0  ;;  %p1408_p5 = por %p1407_p9, %p1406_p6 }
  0x52   : > { %p1402_p1 = pneg %p1401_p13 }
  0x54   : > { %p1409_p10 = pnand %p1408_p5, %p1402_p1 }
  0x56   : > { %1412 = shalt.err (!%p1409_p10)
}
  0x57   : > { %1268 = dma.hbm_to_vmem [thread:$0]  (!%p1598_p12), %s1821_s5, 8192, %s250_s20, [#allocation6], %s1488_s21, %s1488_s21, %s1489_s22  }
  0x58   : > { %p1838_p2 = scmp.ne.s32.totalorder %s1835_s13, 0 }
  0x59   : > { %p1839_p0 = scmp.eq.s32.totalorder (!%p1838_p2), %s1560_s28, 0 }
  0x5a   : > { %275 = sbr.rel (%p1838_p2) target bundleno = 878 (0x36e), region = 48 }
  0x61   : > { %1458 = dma.done.wait (%p1839_p0), [#allocation3], 4096   ;;  %p1840_p3 = pmov %p1839_p0 }
  0x62   : > { %p1841_p5 = pmov %p1839_p0 }
  0x63   : > { %1460 = vsyncadd (%p1840_p3), [#allocation3], 4294963200 }
  0x64   : > { %1462 = dma.done.wait (%p1841_p5), [#allocation6], 12288   ;;  %p1842_p10 = pmov %p1839_p0 }
  0x65   : > { %p314_p4 = scmp.lt.s32.totalorder %s1560_s28, 1  ;;  %v1490_v0 = vmov 0.0   ;;  %vm1491_vm0 = vmmov 0   ;;  %vm320_vm1 = vcmask 64512   ;;  %v319_v1 = vld [vmem:[%s1817_s1] sm:$0xff]  ;;  %v634_v3 = vld [vmem:[#allocation5 + $0x8] sm:$0xff] }
  0x66   : > { %1464 = vsyncadd (%p1842_p10), [#allocation6], 4294955008  ;;  %1106 = vmatprep.subr.mxu0 %v1490_v0  ;;  %1108 = vmatprep.mubr.msk.f32.mxu0 %vm1491_vm0, %v1490_v0  ;;  %v636_v4 = vld [vmem:[#allocation5 + $0x18] sm:$0xff]  ;;  %v633_v6 = vld [vmem:[#allocation5] sm:$0xff]  ;;  %s311_s29 = sand.u32 1, %s1475_s25   ;;  %s1103_s19 = sshll.u32 %s1560_s28, 8 }
  0x67   : > { %s315_s13 = scalar_select %p314_p4, %s1560_s28, 1  ;;  %729 = vmatprep.mubr.f32.mxu1 %v1490_v0  ;;  %1107 = vmatpush3.msra.mxu0 %v319_v1  ;;  %v1111_v5 = vpack.c.bf16 %v636_v4, %v634_v3  ;;  %v635_v7 = vld [vmem:[#allocation5 + $0x10] sm:$0xff]  ;;  %v638_v9 = vld [vmem:[#allocation5 + $0x28] sm:$0xff]  ;;  %v640_v10 = vld [vmem:[#allocation5 + $0x38] sm:$0xff] }
  0x68   : > { %v1113_v8 = vpack.c.bf16 %v635_v7, %v633_v6  ;;  %v1115_v11 = vpack.c.bf16 %v640_v10, %v638_v9  ;;  %v637_v12 = vld [vmem:[#allocation5 + $0x20] sm:$0xff]  ;;  %v639_v13 = vld [vmem:[#allocation5 + $0x30] sm:$0xff]  ;;  %v642_v15 = vld [vmem:[#allocation5 + $0x48] sm:$0xff]  ;;  %s1087_s8 = sshll.u32 %s311_s29, 4  ;;  %s973_s20 = scalar_lea.sflag [#allocation4], %s311_s29 }
  0x69   : > { %s1088_s16 = sshll.u32 %s315_s13, 3  ;;  %1112 = vmatprep.subr.bf16.mxu1 %v1111_v5  ;;  %v1117_v14 = vpack.c.bf16 %v639_v13, %v637_v12  ;;  %v644_v16 = vld [vmem:[#allocation5 + $0x58] sm:$0xff]  ;;  %v641_v18 = vld [vmem:[#allocation5 + $0x40] sm:$0xff]  ;;  %v643_v19 = vld [vmem:[#allocation5 + $0x50] sm:$0xff]  ;;  %s313_s15 = scalar_lea.vmem [#allocation8], %s1087_s8 }
  0x6a   : > { %s317_s21 = scalar_lea.vmem %s1816_s0, %s1088_s16  ;;  %1114 = vmatpush1.bf16.msra.mxu1 %v1113_v8  ;;  %v1119_v17 = vpack.c.bf16 %v644_v16, %v642_v15  ;;  %v1121_v20 = vpack.c.bf16 %v643_v19, %v641_v18  ;;  %v646_v21 = vld [vmem:[#allocation5 + $0x68] sm:$0xff]  ;;  %v648_v22 = vld [vmem:[#allocation5 + $0x78] sm:$0xff]  ;;  %v645_v24 = vld [vmem:[#allocation5 + $0x60] sm:$0xff]  ;;  %s987_s18 = sshll.u32 %s313_s15, 4  ;;  %s1776_s18 = int_to_ptr.vmem [resolvable:$true] %s987_s18 }
  0x6b   : > { %v318_v2 = vld [vmem:[%s317_s21] sm:$0xff]  ;;  %1116 = vmatprep.subr.bf16.mxu1 %v1115_v11  ;;  %v1123_v23 = vpack.c.bf16 %v648_v22, %v646_v21  ;;  %v647_v25 = vld [vmem:[#allocation5 + $0x70] sm:$0xff]  ;;  %v650_v27 = vld [vmem:[#allocation5 + $0x88] sm:$0xff]  ;;  %s1774_s16 = scalar_lea.hbm %s1823_s7, %s1103_s19  ;;  %s1413_s28 = scalar_lea.vmem %s1776_s18, 256 }
  0x6c   : > { %1109 = vmatmul.mubr.msk.f32.vlgmr.msra.gmra.mrb[0].mxu0 %vm320_vm1, %v318_v2  ;;  %v1125_v26 = vpack.c.bf16 %v647_v25, %v645_v24  ;;  %v652_v28 = vld [vmem:[#allocation5 + $0x98] sm:$0xff]  ;;  %v649_v30 = vld [vmem:[#allocation5 + $0x80] sm:$0xff]  ;;  %v651_v31 = vld [vmem:[#allocation5 + $0x90] sm:$0xff]  ;;  %p1414_p12 = scmp.ne.s32.totalorder %s1776_s18, %s1413_s28  ;;  %p1843_p7 = scmp.ne.s32.totalorder %s1833_s11, 0 }
  0x6d   : > { %v1127_v29 = vpack.c.bf16 %v652_v28, %v650_v27  ;;  %v1129_v32 = vpack.c.bf16 %v651_v31, %v649_v30  ;;  %v654_v33 = vld [vmem:[#allocation5 + $0xa8] sm:$0xff]  ;;  %v656_v34 = vld [vmem:[#allocation5 + $0xb8] sm:$0xff]  ;;  %v653_v35 = vld [vmem:[#allocation5 + $0xa0] sm:$0xff]  ;;  %s1498_s9 = smov [#allocation8]  }
  0x6e   : > { %1118 = vmatpush1.bf16.msra.mxu1 %v1117_v14  ;;  %v1131_v36 = vpack.c.bf16 %v656_v34, %v654_v33  ;;  %v655_v37 = vld [vmem:[#allocation5 + $0xb0] sm:$0xff]  ;;  %v658_v38 = vld [vmem:[#allocation5 + $0xc8] sm:$0xff]  ;;  %v660_v39 = vld [vmem:[#allocation5 + $0xd8] sm:$0xff]  ;;  %p1415_p8 = pnand %p1414_p12, %p1843_p7  ;;  %s1417_s21 = sshll.u32 %s1498_s9, 4  ;;  %s1418_s21 = int_to_ptr.vmem [resolvable:$false] %s1417_s21 }
  0x6f   : > { %1120 = vmatprep.subr.bf16.mxu1 %v1119_v17  ;;  %v1133_v40 = vpack.c.bf16 %v655_v37, %v653_v35  ;;  %v1135_v41 = vpack.c.bf16 %v660_v39, %v658_v38  ;;  %v657_v42 = vld [vmem:[#allocation5 + $0xc0] sm:$0xff]  ;;  %v659_v43 = vld [vmem:[#allocation5 + $0xd0] sm:$0xff]  ;;  %v662_v44 = vld [vmem:[#allocation5 + $0xe8] sm:$0xff]  ;;  %s1419_s22 = scalar_lea.vmem %s1418_s21, 512  ;;  %p1420_p13 = scmp.lt.s32.totalorder %s1776_s18, %s1418_s21 }
  0x70   : > { %v664_v45 = vld [vmem:[#allocation5 + $0xf8] sm:$0xff]  ;;  %v1137_v46 = vpack.c.bf16 %v659_v43, %v657_v42  ;;  %v661_v48 = vld [vmem:[#allocation5 + $0xe0] sm:$0xff]  ;;  %v663_v49 = vld [vmem:[#allocation5 + $0xf0] sm:$0xff]  ;;  %p1416_p11 = pneg %p1415_p8  ;;  %p1421_p1 = scmp.lt.s32.totalorder %s1419_s22, %s1413_s28 }
  0x71   : > { %v1139_v47 = vpack.c.bf16 %v664_v45, %v662_v44  ;;  %v602_v50 = vld [vmem:[#allocation2 + $0x8] sm:$0xff]  ;;  %v604_v51 = vld [vmem:[#allocation2 + $0x18] sm:$0xff]  ;;  %v1141_v52 = vpack.c.bf16 %v663_v49, %v661_v48  ;;  %v823_v56 = vld [vmem:[#allocation7] sm:$0xff] }
  0x72   : > { %1122 = vmatpush1.bf16.msra.mxu1 %v1121_v20  ;;  %v1143_v53 = vpack.c.bf16 %v604_v51, %v602_v50  ;;  %v824_v54 = vld [vmem:[#allocation7 + $0x8] sm:$0xff]  ;;  %v826_v55 = vld [vmem:[#allocation7 + $0x18] sm:$0xff]  ;;  %v825_v58 = vld [vmem:[#allocation7 + $0x10] sm:$0xff]  ;;  %p1422_p6 = por %p1421_p1, %p1420_p13 }
  0x73   : > { %1124 = vmatprep.subr.bf16.mxu1 %v1123_v23  ;;  %v1175_v57 = vpack.c.bf16 %v826_v55, %v824_v54  ;;  %v828_v59 = vld [vmem:[#allocation7 + $0x28] sm:$0xff]  ;;  %v830_v60 = vld [vmem:[#allocation7 + $0x38] sm:$0xff]  ;;  %v1177_v61 = vpack.c.bf16 %v825_v58, %v823_v56  ;;  %v827_v63 = vld [vmem:[#allocation7 + $0x20] sm:$0xff] }
  0x74   : > { %v1179_v62 = vpack.c.bf16 %v830_v60, %v828_v59  ;;  %v829_v1 = vld [vmem:[#allocation7 + $0x30] sm:$0xff]  ;;  %v832_v2 = vld [vmem:[#allocation7 + $0x48] sm:$0xff]  ;;  %v834_v3 = vld [vmem:[#allocation7 + $0x58] sm:$0xff]  ;;  %v1492_v59 = vmov 683565275   ;;  %p1423_p9 = pnand %p1422_p6, %p1416_p11 }
  0x75   : > { %1176 = vmatprep.subr.bf16.mxu0 %v1175_v57  ;;  %v1181_v4 = vpack.c.bf16 %v829_v1, %v827_v63  ;;  %v1183_v5 = vpack.c.bf16 %v834_v3, %v832_v2  ;;  %v831_v6 = vld [vmem:[#allocation7 + $0x40] sm:$0xff]  ;;  %v833_v7 = vld [vmem:[#allocation7 + $0x50] sm:$0xff]  ;;  %v836_v8 = vld [vmem:[#allocation7 + $0x68] sm:$0xff]  ;;  %v1494_v2 = vmov 2131351028  }
  0x76   : > { %1126 = vmatpush1.bf16.msra.mxu1 %v1125_v26  ;;  %1178 = vmatpush1.bf16.msra.mxu0 %v1177_v61  ;;  %v838_v9 = vld [vmem:[#allocation7 + $0x78] sm:$0xff]  ;;  %v1185_v10 = vpack.c.bf16 %v833_v7, %v831_v6  ;;  %v835_v12 = vld [vmem:[#allocation7 + $0x60] sm:$0xff]  ;;  %v837_v13 = vld [vmem:[#allocation7 + $0x70] sm:$0xff]  ;;  %v1493_v61 = vmov 2475754826  }
  0x77   : > { %1128 = vmatprep.subr.bf16.mxu1 %v1127_v29  ;;  %1180 = vmatprep.subr.bf16.mxu0 %v1179_v62  ;;  %v1187_v11 = vpack.c.bf16 %v838_v9, %v836_v8  ;;  %v840_v14 = vld [vmem:[#allocation7 + $0x88] sm:$0xff]  ;;  %v842_v15 = vld [vmem:[#allocation7 + $0x98] sm:$0xff]  ;;  %v1189_v16 = vpack.c.bf16 %v837_v13, %v835_v12  ;;  %v839_v19 = vld [vmem:[#allocation7 + $0x80] sm:$0xff]  ;;  %v1496_v8 = vmov 920167782  }
  0x78   : > { %v1191_v18 = vpack.c.bf16 %v842_v15, %v840_v14  ;;  %v841_v20 = vld [vmem:[#allocation7 + $0x90] sm:$0xff]  ;;  %v844_v23 = vld [vmem:[#allocation7 + $0xa8] sm:$0xff]  ;;  %v846_v24 = vld [vmem:[#allocation7 + $0xb8] sm:$0xff] }
  0x79   : > { %v1193_v26 = vpack.c.bf16 %v841_v20, %v839_v19  ;;  %v1195_v27 = vpack.c.bf16 %v846_v24, %v844_v23  ;;  %v843_v28 = vld [vmem:[#allocation7 + $0xa0] sm:$0xff]  ;;  %v845_v29 = vld [vmem:[#allocation7 + $0xb0] sm:$0xff]  ;;  %v848_v31 = vld [vmem:[#allocation7 + $0xc8] sm:$0xff] }
  0x7a   : > { %1130 = vmatpush1.bf16.msra.mxu1 %v1129_v32  ;;  %1182 = vmatpush1.bf16.msra.mxu0 %v1181_v4  ;;  %v850_v32 = vld [vmem:[#allocation7 + $0xd8] sm:$0xff]  ;;  %v1197_v34 = vpack.c.bf16 %v845_v29, %v843_v28  ;;  %v847_v35 = vld [vmem:[#allocation7 + $0xc0] sm:$0xff]  ;;  %v849_v37 = vld [vmem:[#allocation7 + $0xd0] sm:$0xff] }
  0x7b   : > { %1132 = vmatprep.subr.bf16.mxu1 %v1131_v36  ;;  %1184 = vmatprep.subr.bf16.mxu0 %v1183_v5  ;;  %v1199_v36 = vpack.c.bf16 %v850_v32, %v848_v31  ;;  %v852_v38 = vld [vmem:[#allocation7 + $0xe8] sm:$0xff]  ;;  %v854_v39 = vld [vmem:[#allocation7 + $0xf8] sm:$0xff]  ;;  %v853_v42 = vld [vmem:[#allocation7 + $0xf0] sm:$0xff]  ;;  %v1201_v49 = vpack.c.bf16 %v849_v37, %v847_v35  ;;  %v1495_v5 = vmov 2102212464  }
  0x7c   : > { %v856_v43 = vld [vmem:[#allocation7 + $0x108] sm:$0xff]  ;;  %v858_v45 = vld [vmem:[#allocation7 + $0x118] sm:$0xff]  ;;  %v859_v13 = vld [vmem:[#allocation7 + $0x120] sm:$0xff] }
  0x7d   : > { %v860_v50 = vld [vmem:[#allocation7 + $0x128] sm:$0xff]  ;;  %v862_v51 = vld [vmem:[#allocation7 + $0x138] sm:$0xff]  ;;  %v1207_v56 = vpack.c.bf16 %v858_v45, %v856_v43  ;;  %v861_v14 = vld [vmem:[#allocation7 + $0x130] sm:$0xff] }
  0x7e   : > { %1134 = vmatpush1.bf16.msra.mxu1 %v1133_v40  ;;  %1186 = vmatpush1.bf16.msra.mxu0 %v1185_v10  ;;  %v1211_v63 = vpack.c.bf16 %v862_v51, %v860_v50  ;;  %v864_v32 = vld [vmem:[#allocation7 + $0x148] sm:$0xff]  ;;  %v865_v45 = vld [vmem:[#allocation7 + $0x150] sm:$0xff] }
  0x7f   : > { %1136 = vmatprep.subr.bf16.mxu1 %v1135_v41  ;;  %1188 = vmatprep.subr.bf16.mxu0 %v1187_v11  ;;  %v851_v41 = vld [vmem:[#allocation7 + $0xe0] sm:$0xff]  ;;  %v1497_v11 = vmov 1326507024  }
  0x82   : > { %1138 = vmatpush1.bf16.msra.mxu1 %v1137_v46  ;;  %1190 = vmatpush1.bf16.msra.mxu0 %v1189_v16  ;;  %v1711_v46 = vld [vmem:[#allocation7 + $0x100] sm:$0xff] }
  0x83   : > { %1140 = vmatprep.subr.bf16.mxu1 %v1139_v47  ;;  %1192 = vmatprep.subr.bf16.mxu0 %v1191_v18  ;;  %v1713_v47 = vld [vmem:[#allocation7 + $0x110] sm:$0xff] }
  0x84   : > { %v1209_v57 = vpack.c.bf16 %v1713_v47, %v1711_v46  ;;  %v868_v47 = vld [vmem:[#allocation7 + $0x168] sm:$0xff] }
  0x86   : > { %1142 = vmatpush1.bf16.msra.mxu1 %v1141_v52  ;;  %1194 = vmatpush1.bf16.msra.mxu0 %v1193_v26  ;;  %v1203_v52 = vpack.c.bf16 %v854_v39, %v852_v38 }
  0x87   : > { %1144 = vmatprep.subr.bf16.mxu1 %v1143_v53  ;;  %1196 = vmatprep.subr.bf16.mxu0 %v1195_v27  ;;  %v1205_v53 = vpack.c.bf16 %v853_v42, %v851_v41 }
  0x8a   : > { %1198 = vmatpush1.bf16.msra.mxu0 %v1197_v34 }
  0x8b   : > { %1200 = vmatprep.subr.bf16.mxu0 %v1199_v36 }
  0x8e   : > { %1202 = vmatpush1.bf16.msra.mxu0 %v1201_v49 }
  0x8f   : > { %1204 = vmatprep.subr.bf16.mxu0 %v1203_v52 }
  0x92   : > { %1206 = vmatpush1.bf16.msra.mxu0 %v1205_v53  ;;  %v867_v53 = vld [vmem:[#allocation7 + $0x160] sm:$0xff] }
  0x93   : > { %1208 = vmatprep.subr.bf16.mxu0 %v1207_v56  ;;  %v872_v56 = vld [vmem:[#allocation7 + $0x188] sm:$0xff] }
  0x96   : > { %1210 = vmatpush1.bf16.msra.mxu0 %v1209_v57  ;;  %v874_v57 = vld [vmem:[#allocation7 + $0x198] sm:$0xff] }
  0x97   : > { %1212 = vmatprep.subr.bf16.mxu0 %v1211_v63  ;;  %v873_v63 = vld [vmem:[#allocation7 + $0x190] sm:$0xff] }
 0x13f   : > { %v1707_v17 = vpop.f32.mrb[0].mxu0 }
 0x140   : > { %v397_v21 = vand.u32 2139095040, %v1707_v17  ;;  %v1110_v22 = vpop.f32.mrb[1].mxu0  ;;  %v394_v40 = vand.u32 2147483647, %v1707_v17  ;;  %vm396_vm9 = vcmp.lt.s32.totalorder %v1707_v17, 0  ;;  %vm486_vm14 = vweird.f32 %v1707_v17 }
 0x142   : > { %v398_v25 = vshrl.u32 %v397_v21, 23  ;;  %v401_v54 = vand.u32 8388607, %v394_v40  ;;  %vm395_vm10 = vcmp.le.f32.partialorder %v394_v40, 0.7853982  ;;  %v606_v40 = vld [vmem:[#allocation2 + $0x28] sm:$0xff] }
 0x144   : > { %v1090_v30 = vadd.s32 4294967169, %v398_v25  ;;  %v402_v15 = vor.u32 8388608, %v401_v54  ;;  %v1213_v25 = vpack.c.bf16 %v861_v14, %v859_v13  ;;  %v869_v54 = vld [vmem:[#allocation7 + $0x170] sm:$0xff] }
 0x146   : > { %v404_v33 = vadd.s32 1, %v1090_v30  ;;  %v442_v31 = vshll.u32 %v402_v15, 8  ;;  %1214 = vmatpush1.bf16.msra.mxu0 %v1213_v25 }
 0x148   : > { %vm405_vm2 = vcmp.gt.s32.totalorder %v404_v33, 0 }
 0x149   : > { %v406_v44 = vsel %vm405_vm2, %v404_v33, 0  ;;  %v866_v33 = vld [vmem:[#allocation7 + $0x158] sm:$0xff] }
 0x14a   : > { %v408_v48 = vand.u32 31, %v406_v44  ;;  %v407_v58 = vshrl.u32 %v406_v44, 5  ;;  %v1215_v43 = vpack.c.bf16 %v866_v33, %v864_v32  ;;  %v863_v44 = vld [vmem:[#allocation7 + $0x140] sm:$0xff] }
 0x14b   : > { %v1217_v50 = vpack.c.bf16 %v865_v45, %v863_v44  ;;  %v603_v44 = vld [vmem:[#allocation2 + $0x10] sm:$0xff] }
 0x14c   : > { %v409_v55 = vsub.s32 32, %v408_v48  ;;  %v411_v60 = vshll.u32 %v1492_v59, %v408_v48  ;;  %v414_v62 = vshll.u32 %v1493_v61, %v408_v48  ;;  %v417_v4 = vshll.u32 %v1494_v2, %v408_v48  ;;  %1216 = vmatprep.subr.bf16.mxu0 %v1215_v43  ;;  %v601_v43 = vld [vmem:[#allocation2] sm:$0xff] }
 0x14d   : > { %v420_v7 = vshll.u32 %v1495_v5, %v408_v48  ;;  %v423_v10 = vshll.u32 %v1496_v8, %v408_v48  ;;  %vm426_vm3 = vcmp.lt.s32.totalorder %v407_v58, 1  ;;  %vm429_vm4 = vcmp.lt.s32.totalorder %v407_v58, 4  ;;  %v870_v48 = vld [vmem:[#allocation7 + $0x178] sm:$0xff]  ;;  %1218 = vmatpush1.bf16.msra.mxu0 %v1217_v50 }
 0x14e   : > { %v412_v1 = vshrl.u32 %v1493_v61, %v409_v55  ;;  %v415_v3 = vshrl.u32 %v1494_v2, %v409_v55  ;;  %v418_v6 = vshrl.u32 %v1495_v5, %v409_v55  ;;  %v421_v9 = vshrl.u32 %v1496_v8, %v409_v55  ;;  %v878_v2 = vld [vmem:[#allocation7 + $0x1b8] sm:$0xff]  ;;  %v877_v8 = vld [vmem:[#allocation7 + $0x1b0] sm:$0xff] }
 0x14f   : > { %v424_v12 = vshrl.u32 %v1497_v11, %v409_v55  ;;  %v410_v26 = vshrl.u32 %v1492_v59, %v409_v55  ;;  %vm428_vm5 = vcmp.lt.s32.totalorder %v407_v58, 3  ;;  %vm427_vm6 = vcmp.lt.s32.totalorder %v407_v58, 2 }
 0x150   : > { %v413_v16 = vor.u32 %v412_v1, %v411_v60  ;;  %v416_v18 = vor.u32 %v415_v3, %v414_v62  ;;  %v419_v19 = vor.u32 %v418_v6, %v417_v4  ;;  %v422_v20 = vor.u32 %v421_v9, %v420_v7  ;;  %v871_v62 = vld [vmem:[#allocation7 + $0x180] sm:$0xff]  ;;  %v876_v1 = vld [vmem:[#allocation7 + $0x1a8] sm:$0xff] }
 0x151   : > { %v425_v21 = vor.u32 %v424_v12, %v423_v10  ;;  %v1219_v52 = vpack.c.bf16 %v870_v48, %v868_v47  ;;  %v1221_v58 = vpack.c.bf16 %v869_v54, %v867_v53  ;;  %v1223_v61 = vpack.c.bf16 %v874_v57, %v872_v56  ;;  %v875_v7 = vld [vmem:[#allocation7 + $0x1a0] sm:$0xff]  ;;  %v880_v9 = vld [vmem:[#allocation7 + $0x1c8] sm:$0xff]  ;;  %v882_v10 = vld [vmem:[#allocation7 + $0x1d8] sm:$0xff] }
 0x152   : > { %v431_v22 = vsel %vm429_vm4, %v419_v19, 2102212464  ;;  %v434_v23 = vsel %vm426_vm3, %v413_v16, %v416_v18  ;;  %v438_v24 = vsel %vm426_vm3, %v416_v18, %v419_v19  ;;  %v435_v27 = vsel %vm429_vm4, %v422_v20, 920167782  ;;  %v607_v53 = vld [vmem:[#allocation2 + $0x30] sm:$0xff]  ;;  %v612_v56 = vld [vmem:[#allocation2 + $0x58] sm:$0xff] }
 0x153   : > { %v439_v28 = vsel %vm429_vm4, %v425_v21, 1326507024  ;;  %v436_v29 = vsel %vm428_vm5, %v419_v19, %v435_v27  ;;  %v430_v34 = vsel %vm426_vm3, %v410_v26, %v413_v16  ;;  %v432_v35 = vsel %vm428_vm5, %v416_v18, %v431_v22  ;;  %1220 = vmatprep.subr.bf16.mxu0 %v1219_v52  ;;  %v605_v52 = vld [vmem:[#allocation2 + $0x20] sm:$0xff] }
 0x154   : > { %v440_v30 = vsel %vm428_vm5, %v422_v20, %v439_v28  ;;  %v437_v36 = vsel %vm427_vm6, %v434_v23, %v436_v29  ;;  %v433_v46 = vsel %vm427_vm6, %v430_v34, %v432_v35  ;;  %1222 = vmatpush1.bf16.msra.mxu0 %v1221_v58  ;;  %v1225_v4 = vpack.c.bf16 %v873_v63, %v871_v62  ;;  %v609_v58 = vld [vmem:[#allocation2 + $0x40] sm:$0xff]  ;;  %v616_v62 = vld [vmem:[#allocation2 + $0x78] sm:$0xff] }
 0x155   : > { %v441_v37 = vsel %vm427_vm6, %v438_v24, %v440_v30  ;;  %v1727_v41 = vmul.u32.u64.low %v442_v31, %v437_v36  ;;  %v1728_v42 = vmul.u32.u64.high %v442_v31, %v437_v36, %v1727_v41  ;;  %v449_v51 = vmul.u32 %v442_v31, %v433_v46  ;;  %1224 = vmatprep.subr.bf16.mxu0 %v1223_v61  ;;  %v608_v46 = vld [vmem:[#allocation2 + $0x38] sm:$0xff]  ;;  %v614_v61 = vld [vmem:[#allocation2 + $0x68] sm:$0xff] }
 0x156   : > { %v1724_v38 = vmul.u32.u64.low %v442_v31, %v441_v37  ;;  %v1725_v39 = vmul.u32.u64.high %v442_v31, %v441_v37, %v1724_v38  ;;  %v1227_v6 = vpack.c.bf16 %v878_v2, %v876_v1  ;;  %v1229_v12 = vpack.c.bf16 %v877_v8, %v875_v7  ;;  %v613_v2 = vld [vmem:[#allocation2 + $0x60] sm:$0xff] }
 0x157   : > { %v452_v49 = vadd.s32 1, %v1728_v42  ;;  %v1231_v14 = vpack.c.bf16 %v882_v10, %v880_v9  ;;  %v1149_v57 = vpack.c.bf16 %v607_v53, %v605_v52  ;;  %v1155_v1 = vpack.c.bf16 %v616_v62, %v614_v61  ;;  %v617_v8 = vld [vmem:[#allocation2 + $0x80] sm:$0xff]  ;;  %v622_v9 = vld [vmem:[#allocation2 + $0xa8] sm:$0xff]  ;;  %v624_v10 = vld [vmem:[#allocation2 + $0xb8] sm:$0xff] }
 0x158   : > { %vm451_vm7 = vc.u32 %v1725_v39, %v1727_v41  ;;  %1226 = vmatpush1.bf16.msra.mxu0 %v1225_v4  ;;  %v450_v20 = vadd.s32 %v1727_v41, %v1725_v39  ;;  %v618_v4 = vld [vmem:[#allocation2 + $0x88] sm:$0xff] }
 0x159   : > { %v453_v55 = vsel %vm451_vm7, %v452_v49, %v1728_v42  ;;  %1228 = vmatprep.subr.bf16.mxu0 %v1227_v6  ;;  %v1145_v49 = vpack.c.bf16 %v603_v44, %v601_v43  ;;  %v886_v43 = vld [vmem:[#allocation7 + $0x1f8] sm:$0xff] }
 0x15a   : > { %v454_v59 = vadd.s32 %v453_v55, %v449_v51  ;;  %v1147_v51 = vpack.c.bf16 %v608_v46, %v606_v40  ;;  %v610_v55 = vld [vmem:[#allocation2 + $0x48] sm:$0xff]  ;;  %v885_v40 = vld [vmem:[#allocation7 + $0x1f0] sm:$0xff] }
 0x15c   : > { %v455_v60 = vadd.s32 536870912, %v454_v59  ;;  %1230 = vmatpush1.bf16.msra.mxu0 %v1229_v12  ;;  %v1163_v12 = vpack.c.bf16 %v624_v10, %v622_v9 }
 0x15d   : > { %1232 = vmatprep.subr.bf16.mxu0 %v1231_v14  ;;  %v623_v14 = vld [vmem:[#allocation2 + $0xb0] sm:$0xff] }
 0x15e   : > { %v456_v3 = vshrl.u32 %v455_v60, 30  ;;  %v611_v60 = vld [vmem:[#allocation2 + $0x50] sm:$0xff] }
 0x15f   : > { %v1153_v63 = vpack.c.bf16 %v611_v60, %v609_v58 }
 0x160   : > { %v457_v5 = vshll.u32 %v456_v3, 30  ;;  %v480_v34 = vsub.s32 4, %v456_v3 }
 0x162   : > { %v458_v11 = vsub.s32 %v454_v59, %v457_v5  ;;  %v481_v36 = vsel %vm396_vm9, %v480_v34, %v456_v3  ;;  %v1151_v59 = vpack.c.bf16 %v612_v56, %v610_v55  ;;  %v615_v3 = vld [vmem:[#allocation2 + $0x70] sm:$0xff]  ;;  %v620_v5 = vld [vmem:[#allocation2 + $0x98] sm:$0xff]  ;;  %v887_v56 = vld [vmem:[%s1822_s6] sm:$0x3] }
 0x163   : > { %v483_v37 = vsel %vm395_vm10, 0, %v481_v36  ;;  %v1157_v6 = vpack.c.bf16 %v615_v3, %v613_v2  ;;  %v1159_v7 = vpack.c.bf16 %v620_v5, %v618_v4  ;;  %v881_v36 = vld [vmem:[#allocation7 + $0x1d0] sm:$0xff] }
 0x164   : > { %v460_v13 = vsub.s32 0, %v458_v11  ;;  %v591_v38 = vand.u32 3, %v483_v37 }
 0x166   : > { %v1091_v15 = vmin.u32 %v460_v13, %v458_v11  ;;  %vm596_vm11 = vcmp.eq.s32.totalorder %v591_v38, 2  ;;  %vm593_vm12 = vcmp.eq.s32.totalorder %v591_v38, 0  ;;  %vm592_vm13 = vcmp.lt.s32.totalorder %v591_v38, 2  ;;  %v621_v13 = vld [vmem:[#allocation2 + $0xa0] sm:$0xff]  ;;  %v884_v38 = vld [vmem:[#allocation7 + $0x1e8] sm:$0xff] }
 0x167   : > { %v1235_v44 = vpack.c.bf16 %v886_v43, %v884_v38 }
 0x168   : > { %v462_v16 = vclz %v1091_v15  ;;  %v626_v15 = vld [vmem:[#allocation2 + $0xc8] sm:$0xff] }
 0x16a   : > { %v1092_v18 = vadd.s32 4294967294, %v462_v16  ;;  %v628_v16 = vld [vmem:[#allocation2 + $0xd8] sm:$0xff] }
 0x16c   : > { %vm1093_vm8 = vcmp.lt.s32.totalorder %v1092_v18, 0 }
 0x16d   : > { %v465_v19 = vsel %vm1093_vm8, 0, %v1092_v18  ;;  %v487_v18 = vadd.s32 3, %v483_v37 }
 0x16e   : > { %v466_v21 = vsub.s32 32, %v465_v19  ;;  %v470_v22 = vsub.s32 4294967266, %v465_v19  ;;  %v467_v23 = vshll.u32 %v458_v11, %v465_v19  ;;  %v1165_v19 = vpack.c.bf16 %v623_v14, %v621_v13 }
 0x170   : > { %v468_v24 = vshrl.u32 %v450_v20, %v466_v21  ;;  %v471_v25 = vadd.s32 127, %v470_v22  ;;  %v1167_v20 = vpack.c.bf16 %v628_v16, %v626_v15  ;;  %v625_v21 = vld [vmem:[#allocation2 + $0xc0] sm:$0xff]  ;;  %v627_v22 = vld [vmem:[#allocation2 + $0xd0] sm:$0xff] }
 0x172   : > { %v469_v26 = vor.u32 %v468_v24, %v467_v23  ;;  %v472_v27 = vshll.u32 %v471_v25, 23  ;;  %v630_v23 = vld [vmem:[#allocation2 + $0xe8] sm:$0xff]  ;;  %v632_v24 = vld [vmem:[#allocation2 + $0xf8] sm:$0xff]  ;;  %v488_v25 = vand.u32 3, %v487_v18 }
 0x174   : > { %v473_v28 = vor.u32 4788187, %v472_v27  ;;  %v476_v30 = vcvt.s32.f32 %v469_v26  ;;  %v1169_v26 = vpack.c.bf16 %v627_v22, %v625_v21  ;;  %v1171_v27 = vpack.c.bf16 %v632_v24, %v630_v23 }
 0x175   : > { %vm490_vm15 = vcmp.eq.s32.totalorder %v488_v25, 0  ;;  %vm493_vm0 = vcmp.eq.s32.totalorder %v488_v25, 2  ;;  %vm489_vm1 = vcmp.lt.s32.totalorder %v488_v25, 2 }
 0x176   : > { %v474_v29 = vand.u32 2147483647, %v473_v28  ;;  %v629_v28 = vld [vmem:[#allocation2 + $0xe0] sm:$0xff] }
 0x178   : > { %v477_v31 = vmul.f32 %v476_v30, %v474_v29  ;;  %v631_v29 = vld [vmem:[#allocation2 + $0xf0] sm:$0xff] }
 0x179   : > { %v1173_v30 = vpack.c.bf16 %v631_v29, %v629_v28 }
 0x17a   : > { %v478_v32 = vxor.u32 2147483648, %v477_v31 }
 0x17c   : > { %v479_v33 = vsel %vm396_vm9, %v478_v32, %v477_v31 }
 0x17d   : > { %v482_v35 = vsel %vm395_vm10, %v1707_v17, %v479_v33  ;;  %v807_v17 = vld [vmem:[%s1820_s4] sm:$0x3] }
 0x17e   : > { %1325 = vcosq.f32 %v482_v35 }
 0x17f   : > { %1327 = vsinq.f32 %v482_v35  ;;  %v879_v35 = vld [vmem:[#allocation7 + $0x1c0] sm:$0xff] }
 0x180   : > { %v1233_v37 = vpack.c.bf16 %v881_v36, %v879_v35 }
 0x182   : > { %1234 = vmatpush1.bf16.msra.mxu0 %v1233_v37 }
 0x183   : > { %1236 = vmatprep.subr.bf16.mxu0 %v1235_v44 }
 0x188   : > { %v1739_v39 = vpop.eup %1325 }
 0x189   : > { %v1741_v41 = vpop.eup %1327  ;;  %v494_v42 = vxor.u32 2147483648, %v1739_v39 }
 0x18a   : > { %v491_v45 = vxor.u32 2147483648, %v1741_v41 }
 0x18b   : > { %v598_v47 = vsel %vm596_vm11, %v494_v42, %v1741_v41  ;;  %v495_v32 = vsel %vm493_vm0, %v494_v42, %v1741_v41 }
 0x18c   : > { %v595_v48 = vsel %vm593_vm12, %v1739_v39, %v491_v45  ;;  %v492_v31 = vsel %vm490_vm15, %v1739_v39, %v491_v45  ;;  %v883_v45 = vld [vmem:[#allocation7 + $0x1e0] sm:$0xff]  ;;  %v809_v39 = vlaneseq }
 0x18d   : > { %v599_v50 = vsel %vm592_vm13, %v595_v48, %v598_v47  ;;  %v496_v33 = vsel %vm489_vm1, %v492_v31, %v495_v32  ;;  %v1237_v46 = vpack.c.bf16 %v885_v40, %v883_v45 }
 0x18e   : > { %v600_v54 = vsel %vm486_vm14, nan, %v599_v50  ;;  %v497_v34 = vsel %vm486_vm14, nan, %v496_v33  ;;  %v810_v41 = vshrl.u32 %v809_v39, 7 }
 0x18f   : > { %730 = vmatmul.mubr.f32.vlgmr.msra.gmra.mrb[0].mxu1 %v600_v54  ;;  %1238 = vmatpush1.bf16.msra.mxu0 %v1237_v46 }
 0x190   : > { %1146 = vmatpush1.bf16.msra.mxu1 %v1145_v49  ;;  %800 = vmatprep.mubr.f32.mxu1 %v1490_v0  ;;  %v619_v0 = vld [vmem:[#allocation2 + $0x90] sm:$0xff]  ;;  %v811_v42 = vsub.s32 0, %v810_v41  ;;  %v815_v47 = vsub.s32 1, %v810_v41 }
 0x191   : > { %1148 = vmatprep.subr.bf16.mxu1 %v1147_v51  ;;  %v1161_v11 = vpack.c.bf16 %v619_v0, %v617_v8 }
 0x192   : > { %v812_v48 = vrot.slane %v807_v17, %v811_v42  ;;  %v816_v49 = vrot.slane %v807_v17, %v815_v47 }
 0x194   : > { %1150 = vmatpush1.bf16.msra.mxu1 %v1149_v57  ;;  %v892_v57 = vrot.slane %v887_v56, %v811_v42 }
 0x195   : > { %1152 = vmatprep.subr.bf16.mxu1 %v1151_v59  ;;  %v896_v59 = vrot.slane %v887_v56, %v815_v47 }
 0x198   : > { %1154 = vmatpush1.bf16.msra.mxu1 %v1153_v63 }
 0x199   : > { %1156 = vmatprep.subr.bf16.mxu1 %v1155_v1 }
 0x19c   : > { %1158 = vmatpush1.bf16.msra.mxu1 %v1157_v6 }
 0x19d   : > { %1160 = vmatprep.subr.bf16.mxu1 %v1159_v7 }
 0x1a0   : > { %1162 = vmatpush1.bf16.msra.mxu1 %v1161_v11 }
 0x1a1   : > { %1164 = vmatprep.subr.bf16.mxu1 %v1163_v12 }
 0x1a4   : > { %1166 = vmatpush1.bf16.msra.mxu1 %v1165_v19 }
 0x1a5   : > { %1168 = vmatprep.subr.bf16.mxu1 %v1167_v20 }
 0x1a8   : > { %1170 = vmatpush1.bf16.msra.mxu1 %v1169_v26 }
 0x1a9   : > { %1172 = vmatprep.subr.bf16.mxu1 %v1171_v27 }
 0x1ac   : > { %1174 = vmatpush1.bf16.msra.mxu1 %v1173_v30 }
 0x1af   : > { %801 = vmatmul.mubr.f32.vlgmr.msra.gmra.mrb[0].mxu1 %v497_v34 }
 0x282   : > { %v802_v50 = vpop.f32.mrb[0].mxu1 }
 0x283   : > { %v819_v51 = vadd.f32 %v812_v48, %v802_v50  ;;  %v804_v52 = vpop.f32.mrb[1].mxu1 }
 0x284   : > { %v820_v53 = vadd.f32 %v816_v49, %v804_v52 }
 0x285   : > { %v821_v55 = vmax.f32 %v819_v51, 0.0 }
 0x286   : > { %v822_v54 = vmax.f32 %v820_v53, 0.0 }
 0x288   : > { %963 = vmatprep.mubr.f32.mxu0 %v822_v54 }
 0x289   : > { %964 = vmatmul.mubr.f32.vlgmr.msra.gmra.mrb[2].mxu0 %v821_v55 }
 0x35c   : > { %v965_v58 = vpop.f32.mrb[2].mxu0 }
 0x35d   : > { %v966_v60 = vadd.f32 %v965_v58, %v892_v57  ;;  %v967_v61 = vpop.f32.mrb[3].mxu0 }
 0x35e   : > { %v968_v62 = vadd.f32 %v967_v61, %v896_v59 }
 0x35f   : > { %970 = vst [vmem:[%s313_s15] sm:$0xff] %v966_v60 }
 0x360   : > { %971 = vst [vmem:[%s313_s15 + $0x8] sm:$0xff] %v968_v62 }
 0x361   : > { %1426 = shalt.err (!%p1423_p9)
}
 0x362   : > { %s1427_s30 = scalar_lea.hbm %s1774_s16, 256  ;;  %s1431_s29 = scalar_lea.hbm %s1823_s7, 512 }
 0x363   : > { %p1428_p2 = scmp.ne.s32.totalorder %s1774_s16, %s1427_s30  ;;  %p1432_p5 = scmp.lt.u32.totalorder %s1774_s16, %s1823_s7 }
 0x364   : > { %p1433_p10 = scmp.lt.u32.totalorder %s1431_s29, %s1427_s30  ;;  %p1435_p12 = scmp.lt.u32.totalorder %s1427_s30, %s1774_s16 }
 0x365   : > { %p1429_p0 = pnand %p1428_p2, %p1843_p7 }
 0x366   : > { %p1434_p4 = por %p1433_p10, %p1432_p5 }
 0x367   : > { %p1430_p3 = pneg %p1429_p0 }
 0x368   : > { %p1436_p8 = por %p1435_p12, %p1434_p4 }
 0x36a   : > { %p1437_p11 = pnand %p1436_p8, %p1430_p3 }
 0x36c   : > { %1440 = shalt.err (!%p1437_p11)
}
 0x36d   : > { %1257 = dma.vmem_to_hbm [thread:$0]  (%p1843_p7), %s1776_s18, 256, %s1774_s16, %s973_s20  }
 0x36e PF: > { %p1279_p13 = scmp.ge.s32.totalorder %s1483_s27, 2  ;;  %s999_s17 = sand.u32 1, %s1471_s24  }
 0x36f   : > { %p1844_p1 = scmp.ne.s32.totalorder %s1834_s12, 0  ;;  %s1000_s19 = scalar_lea.sflag [#allocation4], %s999_s17 }
 0x371   : > { %p1270_p6 = pnand %p1279_p13, %p1844_p1 }
 0x373   : > { %1466 = dma.done.wait (!%p1270_p6), %s1000_s19, 256  }
 0x374   : > { %1468 = vsyncadd (!%p1270_p6), %s1000_s19, 4294967040  ;;  %s1845_s27 = sld [smem:[#allocation13_spill]]  ;;  %s1846_s15 = sld [smem:[#allocation12_spill]] }
 0x375   : > { %s1847_s26 = sld [smem:[#allocation14_spill]]  ;;  %s1848_s24 = smov %s1475_s25 }
 0x37a   : > { %p19_p9 = scmp.ge.s32.totalorder %s1845_s27, 4   ;;  %s1849_s25 = smov %s1846_s15 }
 0x37c   :  { %21 = sbr.rel (!%p19_p9) target bundleno = 5 (0x5), region = 96 }
 0x383   :  { %1005 = vsyncpa [#allocation3], 1 }
 0x384   :  { %1007 = vsyncpa [#allocation3 + $0x1], 1 }
 0x385   :  { %1008 = vsyncpa [#allocation6], 1 }
 0x386   :  { %1009 = vsyncpa [#allocation4], 1 }
 0x387   :  { %1011 = vsyncpa [#allocation4 + $0x1], 1 }

</bundles_post_ra>
